<compile_context>
chip_gen: v5e
topology: v5e:2x2
jax: 0.10.0
libtpu: 0.0.40
codegen_flags: <defaults>
</compile_context>

<pallas_src>
import math
import functools

import jax
import jax.numpy as jnp
from jax.experimental import pallas as pl
from jax.experimental.pallas import tpu as pltpu


def _informer_block_kernel(
    x_ref,
    wqkv_ref, bqkv_ref, wo_ref, bo_ref,
    g1_ref, be1_ref,
    w1_ref, b1_ref, w2_ref, b2_ref,
    g2_ref, be2_ref,
    out_ref,
    q_s, k_s, v_s,
    *, n_heads, head_dim, u_top, eps):
    bf16 = jnp.bfloat16
    x = x_ref[0]                                   # (T, D) f32
    T, D = x.shape

    # --- fused QKV projection: one bf16 MXU matmul, f32 accumulation ---
    qkv = jnp.dot(x.astype(bf16), wqkv_ref[...],
                  preferred_element_type=jnp.float32) + bqkv_ref[...]   # (T, 3D)
    # NOTE: 1/sqrt(head_dim) is already folded into Wq / bq on the host, so
    # qkv[:, :D] is the pre-scaled q.

    # Scatter per-head slices into (H, T, hd) scratch so the head loop below
    # indexes heads on the cheap leading axis instead of slicing lanes.
    for h in range(n_heads):                       # static: just H small stores
        lo = h * head_dim
        q_s[h] = qkv[:, lo:lo + head_dim]
        k_s[h] = qkv[:, D + lo:D + lo + head_dim]
        v_s[h] = qkv[:, 2 * D + lo:2 * D + lo + head_dim]

    row = jax.lax.broadcasted_iota(jnp.int32, (T, T), 0)   # query index i
    col = jax.lax.broadcasted_iota(jnp.int32, (T, T), 1)   # key index j
    causal = col <= row                            # only this bool mask stays live

    def head_body(h, attn_acc):
        qh = q_s[h]                                # (T, hd) f32 (scale pre-folded)
        kh = k_s[h]
        vh = v_s[h]

        # causal softmax attention for this head (bf16 MXU, f32 accumulate)
        s = jnp.dot(qh.astype(bf16), kh.T.astype(bf16),
                    preferred_element_type=jnp.float32)          # (T, T)
        s = jnp.where(causal, s, -1e30)
        m = jnp.max(s, axis=-1, keepdims=True)
        p = jnp.exp(s - m)
        p = p / jnp.sum(p, axis=-1, keepdims=True)
        oh = jnp.dot(p.astype(bf16), vh.astype(bf16),
                     preferred_element_type=jnp.float32)         # (T, hd)

        # ProbSparse query selection: only the u_top queries with the largest
        # L1 norm keep their attention output, the rest stay zero (matches the
        # torch.zeros_like init + scatter in the reference module).  A strict-
        # greater rank compare == torch.topk for distinct norms.
        if u_top < T:
            qn = jnp.sum(jnp.abs(qh), axis=-1, keepdims=True)    # (T, 1)
            rank = jnp.sum((qn.T > qn).astype(jnp.float32),
                           axis=-1, keepdims=True)               # (T, 1)
            oh = jnp.where(rank < u_top, oh, 0.0)
        # TODO(synk): attention dropout (p=0.1) is identity here (eval mode).

        # fused per-head output projection: attn += o_h @ Wo[h]  (no concat)
        return attn_acc + jnp.dot(oh.astype(bf16), wo_ref[h],
                                  preferred_element_type=jnp.float32)

    attn = jax.lax.fori_loop(0, n_heads, head_body,
                             jnp.zeros((T, D), jnp.float32))
    attn = attn + bo_ref[...]

    # --- residual + LayerNorm 1 ---
    h1 = x + attn
    mu1 = jnp.mean(h1, axis=-1, keepdims=True)
    var1 = jnp.mean((h1 - mu1) ** 2, axis=-1, keepdims=True)
    h1n = (h1 - mu1) * jax.lax.rsqrt(var1 + eps) * g1_ref[...] + be1_ref[...]

    # --- FFN: Linear(D,4D) -> ReLU -> Linear(4D,D) (bf16 MXU, f32 accum) ---
    f = jnp.dot(h1n.astype(bf16), w1_ref[...],
                preferred_element_type=jnp.float32) + b1_ref[...]
    f = jnp.maximum(f, 0.0)
    f = jnp.dot(f.astype(bf16), w2_ref[...],
                preferred_element_type=jnp.float32) + b2_ref[...]

    # --- residual + LayerNorm 2 ---
    h2 = h1n + f
    mu2 = jnp.mean(h2, axis=-1, keepdims=True)
    var2 = jnp.mean((h2 - mu2) ** 2, axis=-1, keepdims=True)
    out_ref[0] = (h2 - mu2) * jax.lax.rsqrt(var2 + eps) * g2_ref[...] + be2_ref[...]


_PARAM_ORDER = ["wqkv", "bqkv", "wo_h", "bo", "g1", "be1",
                "w1", "b1", "w2", "b2", "g2", "be2"]


def prepare_params(params, n_heads):
    """Host-side preprocessing shared by the kernel wrapper and the reference:
    fuse Q/K/V weights, fold the attention scale into Wq/bq, reshape Wo to a
    per-head (H, hd, D) layout, and cast matmul weights to bf16 (biases and
    LayerNorm affine params stay f32)."""
    D = params["wq"].shape[0]
    hd = D // n_heads
    scale = hd ** -0.5
    bf16 = jnp.bfloat16
    wqkv = jnp.concatenate([params["wq"] * scale, params["wk"], params["wv"]], axis=1)
    bqkv = jnp.concatenate([params["bq"] * scale, params["bk"], params["bv"]], axis=1)
    return {
        "wqkv": wqkv.astype(bf16),                                   # (D, 3D)
        "bqkv": bqkv.astype(jnp.float32),                            # (1, 3D)
        "wo_h": params["wo"].reshape(n_heads, hd, D).astype(bf16),   # (H, hd, D)
        "bo": params["bo"],
        "g1": params["g1"], "be1": params["be1"],
        "w1": params["w1"].astype(bf16), "b1": params["b1"],
        "w2": params["w2"].astype(bf16), "b2": params["b2"],
        "g2": params["g2"], "be2": params["be2"],
    }


def causal_informer_block(x, params, *, n_heads, factor=5, eps=1e-5):
    B, T, D = x.shape
    head_dim = D // n_heads
    u_top = min(int(factor * math.log(T)), T)

    pp = prepare_params(params, n_heads)
    param_arrays = [pp[k] for k in _PARAM_ORDER]

    kernel = functools.partial(
        _informer_block_kernel,
        n_heads=n_heads, head_dim=head_dim, u_top=u_top, eps=eps)

    def full_spec(a):
        nd = a.ndim
        return pl.BlockSpec(a.shape, lambda b, _nd=nd: (0,) * _nd)

    grid_spec = pltpu.PrefetchScalarGridSpec(
        num_scalar_prefetch=0,
        grid=(B,),
        in_specs=[pl.BlockSpec((1, T, D), lambda b: (b, 0, 0))]
                 + [full_spec(a) for a in param_arrays],
        out_specs=pl.BlockSpec((1, T, D), lambda b: (b, 0, 0)),
        scratch_shapes=[
            pltpu.VMEM((n_heads, T, head_dim), jnp.float32),   # per-head q
            pltpu.VMEM((n_heads, T, head_dim), jnp.float32),   # per-head k
            pltpu.VMEM((n_heads, T, head_dim), jnp.float32),   # per-head v
        ])

    # TODO(synk): for realistic Informer sizes (D>=512, T>=384) tile the query
    # dimension (grid=(B, T//Tq)) and/or raise vmem_limit_bytes per generation
    # instead of the monolithic per-batch block used here.
    return pl.pallas_call(
        kernel,
        out_shape=jax.ShapeDtypeStruct((B, T, D), jnp.float32),
        grid_spec=grid_spec,
        compiler_params=pltpu.CompilerParams(
            dimension_semantics=("parallel",)),
    )(x, *param_arrays)


def init_params(key, dim, n_heads):
    """Deterministic PyTorch-Linear-style init; weights stored as (in, out)."""
    ks = jax.random.split(key, 6)

    def lin(k, fan_in, fan_out):
        kw, kb = jax.random.split(k)
        bound = 1.0 / math.sqrt(fan_in)
        w = jax.random.uniform(kw, (fan_in, fan_out), jnp.float32, -bound, bound)
        b = jax.random.uniform(kb, (1, fan_out), jnp.float32, -bound, bound)
        return w, b

    p = {}
    p["wq"], p["bq"] = lin(ks[0], dim, dim)
    p["wk"], p["bk"] = lin(ks[1], dim, dim)
    p["wv"], p["bv"] = lin(ks[2], dim, dim)
    p["wo"], p["bo"] = lin(ks[3], dim, dim)
    p["w1"], p["b1"] = lin(ks[4], dim, 4 * dim)
    p["w2"], p["b2"] = lin(ks[5], 4 * dim, dim)
    p["g1"] = jnp.ones((1, dim), jnp.float32)
    p["be1"] = jnp.zeros((1, dim), jnp.float32)
    p["g2"] = jnp.ones((1, dim), jnp.float32)
    p["be2"] = jnp.zeros((1, dim), jnp.float32)
    return p


def reference(x, params, n_heads, factor=5, eps=1e-5):
    """Pure-JAX mirror of the PyTorch forward (eval mode).  Matmul operands are
    cast to bf16 exactly like the kernel (with f32 accumulation) so that the
    discrete top-k query selection and the numerics line up with Pallas."""
    B, T, D = x.shape
    hd = D // n_heads
    u = min(int(factor * math.log(T)), T)
    bf16 = jnp.bfloat16
    pp = prepare_params(params, n_heads)

    qkv = jnp.dot(x.astype(bf16), pp["wqkv"],
                  preferred_element_type=jnp.float32) + pp["bqkv"]      # (B,T,3D)

    def split(a):
        return a.reshape(B, T, n_heads, hd).transpose(0, 2, 1, 3)        # (B,H,T,hd)

    q = split(qkv[..., :D])            # scale already folded in
    k = split(qkv[..., D:2 * D])
    v = split(qkv[..., 2 * D:])

    s = jnp.einsum("bhtd,bhsd->bhts", q.astype(bf16), k.astype(bf16),
                   preferred_element_type=jnp.float32)
    causal = jnp.tril(jnp.ones((T, T), bool))
    s = jnp.where(causal, s, -jnp.inf)
    a = jax.nn.softmax(s, axis=-1)
    o = jnp.einsum("bhts,bhsd->bhtd", a.astype(bf16), v.astype(bf16),
                   preferred_element_type=jnp.float32)

    # ProbSparse top-u query selection (torch.topk on the q L1 norm).
    qn = jnp.sum(jnp.abs(q), axis=-1)                                    # (B,H,T)
    idx = jax.lax.top_k(qn, u)[1]
    sel = jnp.sum(jax.nn.one_hot(idx, T, dtype=jnp.float32), axis=-2) > 0
    o = jnp.where(sel[..., None], o, 0.0)

    attn = jnp.einsum("bhtd,hdk->btk", o.astype(bf16), pp["wo_h"],
                      preferred_element_type=jnp.float32) + pp["bo"]

    def ln(h, g, b):
        mu = jnp.mean(h, axis=-1, keepdims=True)
        var = jnp.mean((h - mu) ** 2, axis=-1, keepdims=True)
        return (h - mu) * jax.lax.rsqrt(var + eps) * g + b

    h1 = ln(x + attn, pp["g1"], pp["be1"])
    f = jnp.maximum(jnp.dot(h1.astype(bf16), pp["w1"],
                            preferred_element_type=jnp.float32) + pp["b1"], 0.0)
    f = jnp.dot(f.astype(bf16), pp["w2"],
                preferred_element_type=jnp.float32) + pp["b2"]
    return ln(h1 + f, pp["g2"], pp["be2"])


if __name__ == "__main__":
    # T=16 => u = int(5*ln(16)) = 13 < T, so the ProbSparse selection path is
    # exercised (3 of the 16 queries get zeroed per head).
    B, T, D, H = 2, 16, 32, 4
    key = jax.random.PRNGKey(0)
    kx, kp = jax.random.split(key)
    x = jax.random.normal(kx, (B, T, D), jnp.float32)
    params = init_params(kp, D, H)

    out = causal_informer_block(x, params, n_heads=H)
    out = jax.block_until_ready(out)
    assert out.shape == (B, T, D)

    ref = reference(x, params, H)
    if not jnp.allclose(out, ref, atol=1e-2, rtol=1e-2):
        err = float(jnp.max(jnp.abs(out - ref)))
        raise AssertionError(f"Pallas kernel mismatch vs reference (max abs err {err})")

    print("KERNEL_OK")
</pallas_src>

<mosaic_0001>
module attributes {stable_mosaic.version = 11 : i64} {
  func.func @_informer_block_kernel(%arg0: i32, %arg1: memref<1x16x32xf32, #tpu.memory_space<vmem>>, %arg2: memref<32x96xbf16, #tpu.memory_space<vmem>>, %arg3: memref<1x96xf32, #tpu.memory_space<vmem>>, %arg4: memref<4x8x32xbf16, #tpu.memory_space<vmem>>, %arg5: memref<1x32xf32, #tpu.memory_space<vmem>>, %arg6: memref<1x32xf32, #tpu.memory_space<vmem>>, %arg7: memref<1x32xf32, #tpu.memory_space<vmem>>, %arg8: memref<32x128xbf16, #tpu.memory_space<vmem>>, %arg9: memref<1x128xf32, #tpu.memory_space<vmem>>, %arg10: memref<128x32xbf16, #tpu.memory_space<vmem>>, %arg11: memref<1x32xf32, #tpu.memory_space<vmem>>, %arg12: memref<1x32xf32, #tpu.memory_space<vmem>>, %arg13: memref<1x32xf32, #tpu.memory_space<vmem>>, %arg14: memref<1x16x32xf32, #tpu.memory_space<vmem>>, %arg15: memref<4x16x8xf32, #tpu.memory_space<vmem>>, %arg16: memref<4x16x8xf32, #tpu.memory_space<vmem>>, %arg17: memref<4x16x8xf32, #tpu.memory_space<vmem>>) attributes {dimension_semantics = [#tpu.dimension_semantics<parallel>], iteration_bounds = array<i64: 2>, scalar_prefetch = 0 : i64, scratch_operands = 3 : i64, tpu.core_type = #tpu.core_type<tc>, window_params = [{transform_indices = @transform_0, window_bounds = array<i64: 1, 16, 32>}, {pipeline_mode = #tpu.pipeline_mode<synchronous>, transform_indices = @transform_1, window_bounds = array<i64: 32, 96>}, {pipeline_mode = #tpu.pipeline_mode<synchronous>, transform_indices = @transform_2, window_bounds = array<i64: 1, 96>}, {pipeline_mode = #tpu.pipeline_mode<synchronous>, transform_indices = @transform_3, window_bounds = array<i64: 4, 8, 32>}, {pipeline_mode = #tpu.pipeline_mode<synchronous>, transform_indices = @transform_4, window_bounds = array<i64: 1, 32>}, {pipeline_mode = #tpu.pipeline_mode<synchronous>, transform_indices = @transform_5, window_bounds = array<i64: 1, 32>}, {pipeline_mode = #tpu.pipeline_mode<synchronous>, transform_indices = @transform_6, window_bounds = array<i64: 1, 32>}, {pipeline_mode = #tpu.pipeline_mode<synchronous>, transform_indices = @transform_7, window_bounds = array<i64: 32, 128>}, {pipeline_mode = #tpu.pipeline_mode<synchronous>, transform_indices = @transform_8, window_bounds = array<i64: 1, 128>}, {pipeline_mode = #tpu.pipeline_mode<synchronous>, transform_indices = @transform_9, window_bounds = array<i64: 128, 32>}, {pipeline_mode = #tpu.pipeline_mode<synchronous>, transform_indices = @transform_10, window_bounds = array<i64: 1, 32>}, {pipeline_mode = #tpu.pipeline_mode<synchronous>, transform_indices = @transform_11, window_bounds = array<i64: 1, 32>}, {pipeline_mode = #tpu.pipeline_mode<synchronous>, transform_indices = @transform_12, window_bounds = array<i64: 1, 32>}, {transform_indices = @transform_13, window_bounds = array<i64: 1, 16, 32>}]} {
    %c0 = arith.constant 0 : index
    %c0_0 = arith.constant 0 : index
    %c0_1 = arith.constant 0 : index
    %0 = vector.load %arg1[%c0, %c0_0, %c0_1] : memref<1x16x32xf32, #tpu.memory_space<vmem>>, vector<1x16x32xf32>
    %1 = vector.shape_cast %0 : vector<1x16x32xf32> to vector<16x32xf32>
    %2 = arith.truncf %1 : vector<16x32xf32> to vector<16x32xbf16>
    %c0_2 = arith.constant 0 : index
    %c0_3 = arith.constant 0 : index
    %3 = vector.load %arg2[%c0_2, %c0_3] : memref<32x96xbf16, #tpu.memory_space<vmem>>, vector<32x96xbf16>
    %cst = arith.constant dense<0.000000e+00> : vector<16x96xf32>
    %4 = tpu.matmul %2, %3, %cst {dimension_numbers = #tpu.dot_dimension_numbers<[1], [0], [0], [1], [0, 0, 1, 1], [], []>} : vector<16x32xbf16>, vector<32x96xbf16>, vector<16x96xf32> -> vector<16x96xf32>
    %c0_4 = arith.constant 0 : index
    %c0_5 = arith.constant 0 : index
    %5 = vector.load %arg3[%c0_4, %c0_5] : memref<1x96xf32, #tpu.memory_space<vmem>>, vector<1x96xf32>
    %6 = vector.broadcast %5 : vector<1x96xf32> to vector<16x96xf32>
    %7 = arith.addf %4, %6 : vector<16x96xf32>
    %8 = vector.extract_strided_slice %7 {offsets = [0, 0], sizes = [16, 8], strides = [1, 1]} : vector<16x96xf32> to vector<16x8xf32>
    %c0_6 = arith.constant 0 : index
    %c0_7 = arith.constant 0 : index
    %c0_8 = arith.constant 0 : index
    %9 = vector.load %arg15[%c0_6, %c0_7, %c0_8] : memref<4x16x8xf32, #tpu.memory_space<vmem>>, vector<1x16x8xf32>
    %10 = vector.shape_cast %9 : vector<1x16x8xf32> to vector<16x8xf32>
    %11 = vector.shape_cast %8 : vector<16x8xf32> to vector<1x16x8xf32>
    tpu.vector_store %arg15[%c0_6, %c0_7, %c0_8], %11 {strides = array<i32>} : memref<4x16x8xf32, #tpu.memory_space<vmem>>, vector<1x16x8xf32>,
    %12 = vector.extract_strided_slice %7 {offsets = [0, 32], sizes = [16, 8], strides = [1, 1]} : vector<16x96xf32> to vector<16x8xf32>
    %c0_9 = arith.constant 0 : index
    %c0_10 = arith.constant 0 : index
    %c0_11 = arith.constant 0 : index
    %13 = vector.load %arg16[%c0_9, %c0_10, %c0_11] : memref<4x16x8xf32, #tpu.memory_space<vmem>>, vector<1x16x8xf32>
    %14 = vector.shape_cast %13 : vector<1x16x8xf32> to vector<16x8xf32>
    %15 = vector.shape_cast %12 : vector<16x8xf32> to vector<1x16x8xf32>
    tpu.vector_store %arg16[%c0_9, %c0_10, %c0_11], %15 {strides = array<i32>} : memref<4x16x8xf32, #tpu.memory_space<vmem>>, vector<1x16x8xf32>,
    %16 = vector.extract_strided_slice %7 {offsets = [0, 64], sizes = [16, 8], strides = [1, 1]} : vector<16x96xf32> to vector<16x8xf32>
    %c0_12 = arith.constant 0 : index
    %c0_13 = arith.constant 0 : index
    %c0_14 = arith.constant 0 : index
    %17 = vector.load %arg17[%c0_12, %c0_13, %c0_14] : memref<4x16x8xf32, #tpu.memory_space<vmem>>, vector<1x16x8xf32>
    %18 = vector.shape_cast %17 : vector<1x16x8xf32> to vector<16x8xf32>
    %19 = vector.shape_cast %16 : vector<16x8xf32> to vector<1x16x8xf32>
    tpu.vector_store %arg17[%c0_12, %c0_13, %c0_14], %19 {strides = array<i32>} : memref<4x16x8xf32, #tpu.memory_space<vmem>>, vector<1x16x8xf32>,
    %20 = vector.extract_strided_slice %7 {offsets = [0, 8], sizes = [16, 8], strides = [1, 1]} : vector<16x96xf32> to vector<16x8xf32>
    %c1 = arith.constant 1 : index
    %c0_15 = arith.constant 0 : index
    %c0_16 = arith.constant 0 : index
    %21 = vector.load %arg15[%c1, %c0_15, %c0_16] : memref<4x16x8xf32, #tpu.memory_space<vmem>>, vector<1x16x8xf32>
    %22 = vector.shape_cast %21 : vector<1x16x8xf32> to vector<16x8xf32>
    %23 = vector.shape_cast %20 : vector<16x8xf32> to vector<1x16x8xf32>
    tpu.vector_store %arg15[%c1, %c0_15, %c0_16], %23 {strides = array<i32>} : memref<4x16x8xf32, #tpu.memory_space<vmem>>, vector<1x16x8xf32>,
    %24 = vector.extract_strided_slice %7 {offsets = [0, 40], sizes = [16, 8], strides = [1, 1]} : vector<16x96xf32> to vector<16x8xf32>
    %c1_17 = arith.constant 1 : index
    %c0_18 = arith.constant 0 : index
    %c0_19 = arith.constant 0 : index
    %25 = vector.load %arg16[%c1_17, %c0_18, %c0_19] : memref<4x16x8xf32, #tpu.memory_space<vmem>>, vector<1x16x8xf32>
    %26 = vector.shape_cast %25 : vector<1x16x8xf32> to vector<16x8xf32>
    %27 = vector.shape_cast %24 : vector<16x8xf32> to vector<1x16x8xf32>
    tpu.vector_store %arg16[%c1_17, %c0_18, %c0_19], %27 {strides = array<i32>} : memref<4x16x8xf32, #tpu.memory_space<vmem>>, vector<1x16x8xf32>,
    %28 = vector.extract_strided_slice %7 {offsets = [0, 72], sizes = [16, 8], strides = [1, 1]} : vector<16x96xf32> to vector<16x8xf32>
    %c1_20 = arith.constant 1 : index
    %c0_21 = arith.constant 0 : index
    %c0_22 = arith.constant 0 : index
    %29 = vector.load %arg17[%c1_20, %c0_21, %c0_22] : memref<4x16x8xf32, #tpu.memory_space<vmem>>, vector<1x16x8xf32>
    %30 = vector.shape_cast %29 : vector<1x16x8xf32> to vector<16x8xf32>
    %31 = vector.shape_cast %28 : vector<16x8xf32> to vector<1x16x8xf32>
    tpu.vector_store %arg17[%c1_20, %c0_21, %c0_22], %31 {strides = array<i32>} : memref<4x16x8xf32, #tpu.memory_space<vmem>>, vector<1x16x8xf32>,
    %32 = vector.extract_strided_slice %7 {offsets = [0, 16], sizes = [16, 8], strides = [1, 1]} : vector<16x96xf32> to vector<16x8xf32>
    %c2 = arith.constant 2 : index
    %c0_23 = arith.constant 0 : index
    %c0_24 = arith.constant 0 : index
    %33 = vector.load %arg15[%c2, %c0_23, %c0_24] : memref<4x16x8xf32, #tpu.memory_space<vmem>>, vector<1x16x8xf32>
    %34 = vector.shape_cast %33 : vector<1x16x8xf32> to vector<16x8xf32>
    %35 = vector.shape_cast %32 : vector<16x8xf32> to vector<1x16x8xf32>
    tpu.vector_store %arg15[%c2, %c0_23, %c0_24], %35 {strides = array<i32>} : memref<4x16x8xf32, #tpu.memory_space<vmem>>, vector<1x16x8xf32>,
    %36 = vector.extract_strided_slice %7 {offsets = [0, 48], sizes = [16, 8], strides = [1, 1]} : vector<16x96xf32> to vector<16x8xf32>
    %c2_25 = arith.constant 2 : index
    %c0_26 = arith.constant 0 : index
    %c0_27 = arith.constant 0 : index
    %37 = vector.load %arg16[%c2_25, %c0_26, %c0_27] : memref<4x16x8xf32, #tpu.memory_space<vmem>>, vector<1x16x8xf32>
    %38 = vector.shape_cast %37 : vector<1x16x8xf32> to vector<16x8xf32>
    %39 = vector.shape_cast %36 : vector<16x8xf32> to vector<1x16x8xf32>
    tpu.vector_store %arg16[%c2_25, %c0_26, %c0_27], %39 {strides = array<i32>} : memref<4x16x8xf32, #tpu.memory_space<vmem>>, vector<1x16x8xf32>,
    %40 = vector.extract_strided_slice %7 {offsets = [0, 80], sizes = [16, 8], strides = [1, 1]} : vector<16x96xf32> to vector<16x8xf32>
    %c2_28 = arith.constant 2 : index
    %c0_29 = arith.constant 0 : index
    %c0_30 = arith.constant 0 : index
    %41 = vector.load %arg17[%c2_28, %c0_29, %c0_30] : memref<4x16x8xf32, #tpu.memory_space<vmem>>, vector<1x16x8xf32>
    %42 = vector.shape_cast %41 : vector<1x16x8xf32> to vector<16x8xf32>
    %43 = vector.shape_cast %40 : vector<16x8xf32> to vector<1x16x8xf32>
    tpu.vector_store %arg17[%c2_28, %c0_29, %c0_30], %43 {strides = array<i32>} : memref<4x16x8xf32, #tpu.memory_space<vmem>>, vector<1x16x8xf32>,
    %44 = vector.extract_strided_slice %7 {offsets = [0, 24], sizes = [16, 8], strides = [1, 1]} : vector<16x96xf32> to vector<16x8xf32>
    %c3 = arith.constant 3 : index
    %c0_31 = arith.constant 0 : index
    %c0_32 = arith.constant 0 : index
    %45 = vector.load %arg15[%c3, %c0_31, %c0_32] : memref<4x16x8xf32, #tpu.memory_space<vmem>>, vector<1x16x8xf32>
    %46 = vector.shape_cast %45 : vector<1x16x8xf32> to vector<16x8xf32>
    %47 = vector.shape_cast %44 : vector<16x8xf32> to vector<1x16x8xf32>
    tpu.vector_store %arg15[%c3, %c0_31, %c0_32], %47 {strides = array<i32>} : memref<4x16x8xf32, #tpu.memory_space<vmem>>, vector<1x16x8xf32>,
    %48 = vector.extract_strided_slice %7 {offsets = [0, 56], sizes = [16, 8], strides = [1, 1]} : vector<16x96xf32> to vector<16x8xf32>
    %c3_33 = arith.constant 3 : index
    %c0_34 = arith.constant 0 : index
    %c0_35 = arith.constant 0 : index
    %49 = vector.load %arg16[%c3_33, %c0_34, %c0_35] : memref<4x16x8xf32, #tpu.memory_space<vmem>>, vector<1x16x8xf32>
    %50 = vector.shape_cast %49 : vector<1x16x8xf32> to vector<16x8xf32>
    %51 = vector.shape_cast %48 : vector<16x8xf32> to vector<1x16x8xf32>
    tpu.vector_store %arg16[%c3_33, %c0_34, %c0_35], %51 {strides = array<i32>} : memref<4x16x8xf32, #tpu.memory_space<vmem>>, vector<1x16x8xf32>,
    %52 = vector.extract_strided_slice %7 {offsets = [0, 88], sizes = [16, 8], strides = [1, 1]} : vector<16x96xf32> to vector<16x8xf32>
    %c3_36 = arith.constant 3 : index
    %c0_37 = arith.constant 0 : index
    %c0_38 = arith.constant 0 : index
    %53 = vector.load %arg17[%c3_36, %c0_37, %c0_38] : memref<4x16x8xf32, #tpu.memory_space<vmem>>, vector<1x16x8xf32>
    %54 = vector.shape_cast %53 : vector<1x16x8xf32> to vector<16x8xf32>
    %55 = vector.shape_cast %52 : vector<16x8xf32> to vector<1x16x8xf32>
    tpu.vector_store %arg17[%c3_36, %c0_37, %c0_38], %55 {strides = array<i32>} : memref<4x16x8xf32, #tpu.memory_space<vmem>>, vector<1x16x8xf32>,
    %56 = tpu.iota {dimensions = array<i32: 0>} : vector<16x16xi32>
    %57 = tpu.iota {dimensions = array<i32: 1>} : vector<16x16xi32>
    %58 = arith.cmpi sle, %57, %56 : vector<16x16xi32>
    %cst_39 = arith.constant 0.000000e+00 : f32
    %59 = vector.broadcast %cst_39 : f32 to vector<16x32xf32>
    %c0_i32 = arith.constant 0 : i32
    %c4_i32 = arith.constant 4 : i32
    %60 = arith.addi %c0_i32, %c4_i32 : i32
    %c1_i32 = arith.constant 1 : i32
    %61 = scf.for %arg18 = %c0_i32 to %60 step %c1_i32 iter_args(%arg19 = %59) -> (vector<16x32xf32>)  : i32 {
      %132 = arith.index_cast %arg18 : i32 to index
      %c0_75 = arith.constant 0 : index
      %c0_76 = arith.constant 0 : index
      %133 = vector.load %arg15[%132, %c0_75, %c0_76] : memref<4x16x8xf32, #tpu.memory_space<vmem>>, vector<1x16x8xf32>
      %134 = vector.shape_cast %133 : vector<1x16x8xf32> to vector<16x8xf32>
      %135 = arith.index_cast %arg18 : i32 to index
      %c0_77 = arith.constant 0 : index
      %c0_78 = arith.constant 0 : index
      %136 = vector.load %arg16[%135, %c0_77, %c0_78] : memref<4x16x8xf32, #tpu.memory_space<vmem>>, vector<1x16x8xf32>
      %137 = vector.shape_cast %136 : vector<1x16x8xf32> to vector<16x8xf32>
      %138 = arith.index_cast %arg18 : i32 to index
      %c0_79 = arith.constant 0 : index
      %c0_80 = arith.constant 0 : index
      %139 = vector.load %arg17[%138, %c0_79, %c0_80] : memref<4x16x8xf32, #tpu.memory_space<vmem>>, vector<1x16x8xf32>
      %140 = vector.shape_cast %139 : vector<1x16x8xf32> to vector<16x8xf32>
      %141 = arith.truncf %134 : vector<16x8xf32> to vector<16x8xbf16>
      %142 = tpu.transpose %137, [1, 0] : vector<16x8xf32> -> vector<8x16xf32>
      %143 = arith.truncf %142 : vector<8x16xf32> to vector<8x16xbf16>
      %cst_81 = arith.constant dense<0.000000e+00> : vector<16x16xf32>
      %144 = tpu.matmul %141, %143, %cst_81 {dimension_numbers = #tpu.dot_dimension_numbers<[1], [0], [0], [1], [0, 0, 1, 1], [], []>} : vector<16x8xbf16>, vector<8x16xbf16>, vector<16x16xf32> -> vector<16x16xf32>
      %cst_82 = arith.constant -1.000000e+30 : f32
      %145 = vector.broadcast %cst_82 : f32 to vector<16x16xf32>
      %146 = arith.select %58, %144, %145 : vector<16x16xi1>, vector<16x16xf32>
      %cst_83 = arith.constant dense<0xFF800000> : vector<16xf32>
      %147 = vector.multi_reduction <maximumf>, %146, %cst_83 [1] : vector<16x16xf32> to vector<16xf32>
      %148 = vector.shape_cast %147 : vector<16xf32> to vector<16x1xf32>
      %149 = vector.broadcast %148 : vector<16x1xf32> to vector<16x16xf32>
      %150 = arith.subf %146, %149 : vector<16x16xf32>
      %151 = math.exp %150 : vector<16x16xf32>
      %cst_84 = arith.constant dense<0.000000e+00> : vector<16xf32>
      %152 = vector.multi_reduction <add>, %151, %cst_84 [1] : vector<16x16xf32> to vector<16xf32>
      %153 = vector.shape_cast %152 : vector<16xf32> to vector<16x1xf32>
      %154 = vector.broadcast %153 : vector<16x1xf32> to vector<16x16xf32>
      %155 = arith.divf %151, %154 : vector<16x16xf32>
      %156 = arith.truncf %155 : vector<16x16xf32> to vector<16x16xbf16>
      %157 = arith.truncf %140 : vector<16x8xf32> to vector<16x8xbf16>
      %cst_85 = arith.constant dense<0.000000e+00> : vector<16x8xf32>
      %158 = tpu.matmul %156, %157, %cst_85 {dimension_numbers = #tpu.dot_dimension_numbers<[1], [0], [0], [1], [0, 0, 1, 1], [], []>} : vector<16x16xbf16>, vector<16x8xbf16>, vector<16x8xf32> -> vector<16x8xf32>
      %159 = math.absf %134 : vector<16x8xf32>
      %cst_86 = arith.constant dense<0.000000e+00> : vector<16xf32>
      %160 = vector.multi_reduction <add>, %159, %cst_86 [1] : vector<16x8xf32> to vector<16xf32>
      %161 = vector.shape_cast %160 : vector<16xf32> to vector<16x1xf32>
      %162 = tpu.transpose %161, [1, 0] : vector<16x1xf32> -> vector<1x16xf32>
      %163 = vector.broadcast %162 : vector<1x16xf32> to vector<16x16xf32>
      %164 = vector.broadcast %161 : vector<16x1xf32> to vector<16x16xf32>
      %165 = arith.cmpf ogt, %163, %164 : vector<16x16xf32>
      %166 = arith.extui %165 : vector<16x16xi1> to vector<16x16xi32>
      %167 = arith.sitofp %166 : vector<16x16xi32> to vector<16x16xf32>
      %cst_87 = arith.constant dense<0.000000e+00> : vector<16xf32>
      %168 = vector.multi_reduction <add>, %167, %cst_87 [1] : vector<16x16xf32> to vector<16xf32>
      %169 = vector.shape_cast %168 : vector<16xf32> to vector<16x1xf32>
      %cst_88 = arith.constant 1.300000e+01 : f32
      %170 = vector.broadcast %cst_88 : f32 to vector<16x1xf32>
      %171 = arith.cmpf olt, %169, %170 : vector<16x1xf32>
      %cst_89 = arith.constant 0.000000e+00 : f32
      %172 = vector.shape_cast %171 : vector<16x1xi1> to vector<16x1xi1>
      %173 = vector.broadcast %172 : vector<16x1xi1> to vector<16x8xi1>
      %174 = vector.broadcast %cst_89 : f32 to vector<16x8xf32>
      %175 = arith.select %173, %158, %174 : vector<16x8xi1>, vector<16x8xf32>
      %176 = arith.truncf %175 : vector<16x8xf32> to vector<16x8xbf16>
      %177 = arith.index_cast %arg18 : i32 to index
      %c0_90 = arith.constant 0 : index
      %c0_91 = arith.constant 0 : index
      %178 = vector.load %arg4[%177, %c0_90, %c0_91] : memref<4x8x32xbf16, #tpu.memory_space<vmem>>, vector<1x8x32xbf16>
      %179 = vector.shape_cast %178 : vector<1x8x32xbf16> to vector<8x32xbf16>
      %cst_92 = arith.constant dense<0.000000e+00> : vector<16x32xf32>
      %180 = tpu.matmul %176, %179, %cst_92 {dimension_numbers = #tpu.dot_dimension_numbers<[1], [0], [0], [1], [0, 0, 1, 1], [], []>} : vector<16x8xbf16>, vector<8x32xbf16>, vector<16x32xf32> -> vector<16x32xf32>
      %181 = arith.addf %arg19, %180 : vector<16x32xf32>
      scf.yield %181 : vector<16x32xf32>
    }
    %c4_i32_40 = arith.constant 4 : i32
    %c0_41 = arith.constant 0 : index
    %c0_42 = arith.constant 0 : index
    %62 = vector.load %arg5[%c0_41, %c0_42] : memref<1x32xf32, #tpu.memory_space<vmem>>, vector<1x32xf32>
    %63 = vector.broadcast %62 : vector<1x32xf32> to vector<16x32xf32>
    %64 = arith.addf %61, %63 : vector<16x32xf32>
    %65 = arith.addf %1, %64 : vector<16x32xf32>
    %cst_43 = arith.constant dense<0.000000e+00> : vector<16xf32>
    %66 = vector.multi_reduction <add>, %65, %cst_43 [1] : vector<16x32xf32> to vector<16xf32>
    %67 = vector.shape_cast %66 : vector<16xf32> to vector<16x1xf32>
    %cst_44 = arith.constant 3.200000e+01 : f32
    %68 = vector.broadcast %cst_44 : f32 to vector<16x1xf32>
    %69 = arith.divf %67, %68 : vector<16x1xf32>
    %70 = vector.broadcast %69 : vector<16x1xf32> to vector<16x32xf32>
    %71 = arith.subf %65, %70 : vector<16x32xf32>
    %72 = arith.mulf %71, %71 : vector<16x32xf32>
    %cst_45 = arith.constant dense<0.000000e+00> : vector<16xf32>
    %73 = vector.multi_reduction <add>, %72, %cst_45 [1] : vector<16x32xf32> to vector<16xf32>
    %74 = vector.shape_cast %73 : vector<16xf32> to vector<16x1xf32>
    %cst_46 = arith.constant 3.200000e+01 : f32
    %75 = vector.broadcast %cst_46 : f32 to vector<16x1xf32>
    %76 = arith.divf %74, %75 : vector<16x1xf32>
    %77 = vector.broadcast %69 : vector<16x1xf32> to vector<16x32xf32>
    %78 = arith.subf %65, %77 : vector<16x32xf32>
    %cst_47 = arith.constant 9.99999974E-6 : f32
    %79 = vector.broadcast %cst_47 : f32 to vector<16x1xf32>
    %80 = arith.addf %76, %79 : vector<16x1xf32>
    %81 = math.rsqrt %80 : vector<16x1xf32>
    %82 = vector.broadcast %81 : vector<16x1xf32> to vector<16x32xf32>
    %83 = arith.mulf %78, %82 : vector<16x32xf32>
    %c0_48 = arith.constant 0 : index
    %c0_49 = arith.constant 0 : index
    %84 = vector.load %arg6[%c0_48, %c0_49] : memref<1x32xf32, #tpu.memory_space<vmem>>, vector<1x32xf32>
    %85 = vector.broadcast %84 : vector<1x32xf32> to vector<16x32xf32>
    %86 = arith.mulf %83, %85 : vector<16x32xf32>
    %c0_50 = arith.constant 0 : index
    %c0_51 = arith.constant 0 : index
    %87 = vector.load %arg7[%c0_50, %c0_51] : memref<1x32xf32, #tpu.memory_space<vmem>>, vector<1x32xf32>
    %88 = vector.broadcast %87 : vector<1x32xf32> to vector<16x32xf32>
    %89 = arith.addf %86, %88 : vector<16x32xf32>
    %90 = arith.truncf %89 : vector<16x32xf32> to vector<16x32xbf16>
    %c0_52 = arith.constant 0 : index
    %c0_53 = arith.constant 0 : index
    %91 = vector.load %arg8[%c0_52, %c0_53] : memref<32x128xbf16, #tpu.memory_space<vmem>>, vector<32x128xbf16>
    %cst_54 = arith.constant dense<0.000000e+00> : vector<16x128xf32>
    %92 = tpu.matmul %90, %91, %cst_54 {dimension_numbers = #tpu.dot_dimension_numbers<[1], [0], [0], [1], [0, 0, 1, 1], [], []>} : vector<16x32xbf16>, vector<32x128xbf16>, vector<16x128xf32> -> vector<16x128xf32>
    %c0_55 = arith.constant 0 : index
    %c0_56 = arith.constant 0 : index
    %93 = vector.load %arg9[%c0_55, %c0_56] : memref<1x128xf32, #tpu.memory_space<vmem>>, vector<1x128xf32>
    %94 = vector.broadcast %93 : vector<1x128xf32> to vector<16x128xf32>
    %95 = arith.addf %92, %94 : vector<16x128xf32>
    %cst_57 = arith.constant 0.000000e+00 : f32
    %96 = vector.broadcast %cst_57 : f32 to vector<16x128xf32>
    %97 = arith.maximumf %95, %96 : vector<16x128xf32>
    %98 = arith.truncf %97 : vector<16x128xf32> to vector<16x128xbf16>
    %c0_58 = arith.constant 0 : index
    %c0_59 = arith.constant 0 : index
    %99 = vector.load %arg10[%c0_58, %c0_59] : memref<128x32xbf16, #tpu.memory_space<vmem>>, vector<128x32xbf16>
    %cst_60 = arith.constant dense<0.000000e+00> : vector<16x32xf32>
    %100 = tpu.matmul %98, %99, %cst_60 {dimension_numbers = #tpu.dot_dimension_numbers<[1], [0], [0], [1], [0, 0, 1, 1], [], []>} : vector<16x128xbf16>, vector<128x32xbf16>, vector<16x32xf32> -> vector<16x32xf32>
    %c0_61 = arith.constant 0 : index
    %c0_62 = arith.constant 0 : index
    %101 = vector.load %arg11[%c0_61, %c0_62] : memref<1x32xf32, #tpu.memory_space<vmem>>, vector<1x32xf32>
    %102 = vector.broadcast %101 : vector<1x32xf32> to vector<16x32xf32>
    %103 = arith.addf %100, %102 : vector<16x32xf32>
    %104 = arith.addf %89, %103 : vector<16x32xf32>
    %cst_63 = arith.constant dense<0.000000e+00> : vector<16xf32>
    %105 = vector.multi_reduction <add>, %104, %cst_63 [1] : vector<16x32xf32> to vector<16xf32>
    %106 = vector.shape_cast %105 : vector<16xf32> to vector<16x1xf32>
    %cst_64 = arith.constant 3.200000e+01 : f32
    %107 = vector.broadcast %cst_64 : f32 to vector<16x1xf32>
    %108 = arith.divf %106, %107 : vector<16x1xf32>
    %109 = vector.broadcast %108 : vector<16x1xf32> to vector<16x32xf32>
    %110 = arith.subf %104, %109 : vector<16x32xf32>
    %111 = arith.mulf %110, %110 : vector<16x32xf32>
    %cst_65 = arith.constant dense<0.000000e+00> : vector<16xf32>
    %112 = vector.multi_reduction <add>, %111, %cst_65 [1] : vector<16x32xf32> to vector<16xf32>
    %113 = vector.shape_cast %112 : vector<16xf32> to vector<16x1xf32>
    %cst_66 = arith.constant 3.200000e+01 : f32
    %114 = vector.broadcast %cst_66 : f32 to vector<16x1xf32>
    %115 = arith.divf %113, %114 : vector<16x1xf32>
    %116 = vector.broadcast %108 : vector<16x1xf32> to vector<16x32xf32>
    %117 = arith.subf %104, %116 : vector<16x32xf32>
    %cst_67 = arith.constant 9.99999974E-6 : f32
    %118 = vector.broadcast %cst_67 : f32 to vector<16x1xf32>
    %119 = arith.addf %115, %118 : vector<16x1xf32>
    %120 = math.rsqrt %119 : vector<16x1xf32>
    %121 = vector.broadcast %120 : vector<16x1xf32> to vector<16x32xf32>
    %122 = arith.mulf %117, %121 : vector<16x32xf32>
    %c0_68 = arith.constant 0 : index
    %c0_69 = arith.constant 0 : index
    %123 = vector.load %arg12[%c0_68, %c0_69] : memref<1x32xf32, #tpu.memory_space<vmem>>, vector<1x32xf32>
    %124 = vector.broadcast %123 : vector<1x32xf32> to vector<16x32xf32>
    %125 = arith.mulf %122, %124 : vector<16x32xf32>
    %c0_70 = arith.constant 0 : index
    %c0_71 = arith.constant 0 : index
    %126 = vector.load %arg13[%c0_70, %c0_71] : memref<1x32xf32, #tpu.memory_space<vmem>>, vector<1x32xf32>
    %127 = vector.broadcast %126 : vector<1x32xf32> to vector<16x32xf32>
    %128 = arith.addf %125, %127 : vector<16x32xf32>
    %c0_72 = arith.constant 0 : index
    %c0_73 = arith.constant 0 : index
    %c0_74 = arith.constant 0 : index
    %129 = vector.load %arg14[%c0_72, %c0_73, %c0_74] : memref<1x16x32xf32, #tpu.memory_space<vmem>>, vector<1x16x32xf32>
    %130 = vector.shape_cast %129 : vector<1x16x32xf32> to vector<16x32xf32>
    %131 = vector.shape_cast %128 : vector<16x32xf32> to vector<1x16x32xf32>
    tpu.vector_store %arg14[%c0_72, %c0_73, %c0_74], %131 {strides = array<i32>} : memref<1x16x32xf32, #tpu.memory_space<vmem>>, vector<1x16x32xf32>,
    return
  }
  func.func @transform_0(%arg0: i32) -> (i32, i32, i32) {
    %c0_i32 = arith.constant 0 : i32
    %c0_i32_0 = arith.constant 0 : i32
    %c0_i32_1 = arith.constant 0 : i32
    return %arg0, %c0_i32, %c0_i32_0 : i32, i32, i32
  }
  func.func @transform_1(%arg0: i32) -> (i32, i32) {
    %c0_i32 = arith.constant 0 : i32
    %c0_i32_0 = arith.constant 0 : i32
    %c0_i32_1 = arith.constant 0 : i32
    return %c0_i32, %c0_i32_0 : i32, i32
  }
  func.func @transform_2(%arg0: i32) -> (i32, i32) {
    %c0_i32 = arith.constant 0 : i32
    %c0_i32_0 = arith.constant 0 : i32
    %c0_i32_1 = arith.constant 0 : i32
    return %c0_i32, %c0_i32_0 : i32, i32
  }
  func.func @transform_3(%arg0: i32) -> (i32, i32, i32) {
    %c0_i32 = arith.constant 0 : i32
    %c0_i32_0 = arith.constant 0 : i32
    %c0_i32_1 = arith.constant 0 : i32
    %c0_i32_2 = arith.constant 0 : i32
    return %c0_i32, %c0_i32_0, %c0_i32_1 : i32, i32, i32
  }
  func.func @transform_4(%arg0: i32) -> (i32, i32) {
    %c0_i32 = arith.constant 0 : i32
    %c0_i32_0 = arith.constant 0 : i32
    %c0_i32_1 = arith.constant 0 : i32
    return %c0_i32, %c0_i32_0 : i32, i32
  }
  func.func @transform_5(%arg0: i32) -> (i32, i32) {
    %c0_i32 = arith.constant 0 : i32
    %c0_i32_0 = arith.constant 0 : i32
    %c0_i32_1 = arith.constant 0 : i32
    return %c0_i32, %c0_i32_0 : i32, i32
  }
  func.func @transform_6(%arg0: i32) -> (i32, i32) {
    %c0_i32 = arith.constant 0 : i32
    %c0_i32_0 = arith.constant 0 : i32
    %c0_i32_1 = arith.constant 0 : i32
    return %c0_i32, %c0_i32_0 : i32, i32
  }
  func.func @transform_7(%arg0: i32) -> (i32, i32) {
    %c0_i32 = arith.constant 0 : i32
    %c0_i32_0 = arith.constant 0 : i32
    %c0_i32_1 = arith.constant 0 : i32
    return %c0_i32, %c0_i32_0 : i32, i32
  }
  func.func @transform_8(%arg0: i32) -> (i32, i32) {
    %c0_i32 = arith.constant 0 : i32
    %c0_i32_0 = arith.constant 0 : i32
    %c0_i32_1 = arith.constant 0 : i32
    return %c0_i32, %c0_i32_0 : i32, i32
  }
  func.func @transform_9(%arg0: i32) -> (i32, i32) {
    %c0_i32 = arith.constant 0 : i32
    %c0_i32_0 = arith.constant 0 : i32
    %c0_i32_1 = arith.constant 0 : i32
    return %c0_i32, %c0_i32_0 : i32, i32
  }
  func.func @transform_10(%arg0: i32) -> (i32, i32) {
    %c0_i32 = arith.constant 0 : i32
    %c0_i32_0 = arith.constant 0 : i32
    %c0_i32_1 = arith.constant 0 : i32
    return %c0_i32, %c0_i32_0 : i32, i32
  }
  func.func @transform_11(%arg0: i32) -> (i32, i32) {
    %c0_i32 = arith.constant 0 : i32
    %c0_i32_0 = arith.constant 0 : i32
    %c0_i32_1 = arith.constant 0 : i32
    return %c0_i32, %c0_i32_0 : i32, i32
  }
  func.func @transform_12(%arg0: i32) -> (i32, i32) {
    %c0_i32 = arith.constant 0 : i32
    %c0_i32_0 = arith.constant 0 : i32
    %c0_i32_1 = arith.constant 0 : i32
    return %c0_i32, %c0_i32_0 : i32, i32
  }
  func.func @transform_13(%arg0: i32) -> (i32, i32, i32) {
    %c0_i32 = arith.constant 0 : i32
    %c0_i32_0 = arith.constant 0 : i32
    %c0_i32_1 = arith.constant 0 : i32
    return %arg0, %c0_i32, %c0_i32_0 : i32, i32, i32
  }
}

</mosaic_0001>

<bundles_post_ra>
// kernel: tpu_custom_call.1
= control target key start
LH: loop header
LB: loop body
LE: loop exit
PB: predicated region body
PF: predicated region fallthrough
CT: control target
= control target key end

     0   :  { %s1806_s0 = inlined_call_operand.vmem [shape: f32[2,16,32], index: 0, kind: input, shape index: {}]   ;;  %s1807_s1 = inlined_call_operand.vmem [shape: bf16[32,96], index: 1, kind: input, shape index: {}]   ;;  %s1808_s2 = inlined_call_operand.vmem [shape: f32[1,96], index: 2, kind: input, shape index: {}]   ;;  %s1809_s3 = inlined_call_operand.vmem [shape: bf16[4,8,32], index: 3, kind: input, shape index: {}]   ;;  %s1810_s4 = inlined_call_operand.vmem [shape: f32[1,32], index: 4, kind: input, shape index: {}]   ;;  %s1811_s5 = inlined_call_operand.vmem [shape: f32[1,32], index: 5, kind: input, shape index: {}]   ;;  %s1812_s6 = inlined_call_operand.vmem [shape: f32[1,32], index: 6, kind: input, shape index: {}]   ;;  %s1813_s7 = inlined_call_operand.vmem [shape: bf16[32,128], index: 7, kind: input, shape index: {}]   ;;  %s1814_s8 = inlined_call_operand.vmem [shape: f32[1,128], index: 8, kind: input, shape index: {}]   ;;  %s1815_s9 = inlined_call_operand.vmem [shape: bf16[128,32], index: 9, kind: input, shape index: {}]   ;;  %s1816_s10 = inlined_call_operand.vmem [shape: f32[1,32], index: 10, kind: input, shape index: {}]   ;;  %s1817_s11 = inlined_call_operand.vmem [shape: f32[1,32], index: 11, kind: input, shape index: {}]   ;;  %s1818_s12 = inlined_call_operand.vmem [shape: f32[1,32], index: 12, kind: input, shape index: {}]   ;;  %s1819_s13 = inlined_call_operand.hbm [shape: f32[2,16,32], index: 13, kind: output, shape index: {}]  }
   0x1   :  { %1824 = sst [smem:[#allocation11_spill]] %s1806_s0 }
   0x2   :  { %18 = vsyncpa [#allocation6], 0 }
   0x3   :  { %20 = vsyncpa [#allocation6 + $0x1], 0  ;;  %s1531_s25 = smov 0   ;;  %s1533_s26 = smov 0  }
   0x4   :  { %s1535_s27 = smov 0   ;;  %s1537_s28 = smov 0  }
   0x5 LB: > { %1825 = sst [smem:[#allocation8_spill]] %s1428_s27  ;;  %s1552_s29 = sadd.s32 4294967295, %s1432_s28   ;;  %s1432_s28 = sphi %s1537_s28, %s1834_s28   ;;  %s1428_s27 = sphi %s1535_s27, %s1836_s27   ;;  %s1424_s26 = sphi %s1533_s26, %s1838_s26   ;;  %s1420_s25 = sphi %s1531_s25, %s1837_s25  }
   0x6   : > { %s1171_s30 = sadd.s32 4294967294, %s1432_s28   ;;  %s1556_s14 = sadd.s32 1, %s1432_s28  }
   0x7   : > { %1826 = sst [smem:[#allocation9_spill]] %s1556_s14  ;;  %s311_s15 = sadd.s32 1, %s1428_s27 }
   0x8   : > { %s308_s16 = ssub.s32 %s1432_s28, %s1556_s14  ;;  %p321_p0 = scmp.ne.s32.totalorder %s1428_s27, %s1424_s26 }
   0x9   : > { %p309_p1 = scmp.eq.s32.totalorder %s308_s16, 0  ;;  %p322_p2 = scmp.eq.s32.totalorder %s1552_s29, 1 }
   0xa   : > { %p327_p3 = scmp.ne.s32.totalorder %s1424_s26, %s1420_s25  ;;  %p328_p4 = scmp.eq.s32.totalorder %s1171_s30, 1 }
   0xb   : > { %s1567_s17 = scalar_select %p309_p1, %s1428_s27, %s311_s15  }
   0xc   : > { %p1569_p5 = por %p322_p2, %p321_p0  ;;  %p1573_p6 = por %p328_p4, %p327_p3 }
   0xd   : > { %1827 = sst [smem:[#allocation10_spill]] %s1567_s17  ;;  %p1174_p7 = scmp.ge.s32.totalorder %s1432_s28, 1 }
   0xe   : > { %p390_p8 = scmp.lt.s32.totalorder %s1432_s28, 3 }
  0x10   : > { %p391_p9 = pnand %p1174_p7, %p390_p8 }
  0x11   : > { %s1823_s20 = sand.u32 (!%p391_p9), 1, %s1424_s26   ;;  %p434_p10 = scmp.lt.s32.totalorder (!%p391_p9), %s1552_s29, 1 }
  0x12   : > { %394 = sbr.rel (%p391_p9) target bundleno = 2064 (0x810), region = 72  ;;  %s1586_s23 = sshll.u32 (!%p391_p9), %s1823_s20, 4 }
  0x13   : > { %s1830_s0 = sld [smem:[#allocation11_spill]] (!%p391_p9)  ;;  %s1446_s27 = smov (!%p391_p9), 120  }
  0x14   : > { %s1447_s17 = smov (!%p391_p9), 64   ;;  %s1449_s24 = smov (!%p391_p9), 56  }
  0x15   : > { %s1450_s30 = smov (!%p391_p9), 112   ;;  %s1453_s21 = smov (!%p391_p9), 104  }
  0x16   : > { %s1454_s22 = smov (!%p391_p9), 80   ;;  %s1455_s20 = smov (!%p391_p9), 72  }
  0x17   : > { %v1242_v0 = vld [vmem:[%s1807_s1 + $0x8] sm:$0xff]  ;;  %v1241_v1 = vld [vmem:[%s1807_s1] sm:$0xff]  ;;  %s435_s15 = scalar_select %p434_p10, %s1552_s29, 1  ;;  %vm463_vm0 = vcmask 261120   ;;  %vm481_vm1 = vcmask 64512   ;;  %v583_v22 = vlaneseq  ;;  %v1643_v36 = vmov 0.0  }
  0x18   : > { %473 = vmatpush.bf16.msra.mxu0 %v1242_v0  ;;  %v1332_v5 = vld [vmem:[%s1808_s2] ss:$0 sm:$0xff]  ;;  %v1645_v37 = vmov 0.0  }
  0x19   : > { %s1240_s16 = sshll.u32 %s435_s15, 4  ;;  %s1451_s15 = smov 88   ;;  %v1619_v23 = vshrl.u32 %v583_v22, 7  ;;  %v1625_v28 = vand.u32 127, %v583_v22 }
  0x1a   : > { %s438_s14 = scalar_lea.vmem %s1830_s0, %s1240_s16  ;;  %s1452_s16 = smov 48  }
  0x1b   : > { %v1595_v2 = vld [vmem:[%s438_s14] sm:$0xff]  ;;  %v1597_v3 = vld [vmem:[%s438_s14 + $0x8] sm:$0xff]  ;;  %s1448_s14 = smov 96   ;;  %s1456_s0 = smov 40   ;;  %v1623_v27 = vadd.s32 8, %v1619_v23  ;;  %vm588_vm2 = vcmp.le.s32.totalorder %v1625_v28, %v1619_v23 }
  0x1c   : > { %474 = vmatpush.bf16.msra.mxu0 %v1241_v1  ;;  %v442_v4 = vpack.c.bf16 %v1597_v3, %v1595_v2 }
  0x1d   : > { %vm589_vm3 = vcmp.le.s32.totalorder %v1625_v28, %v1623_v27 }
  0x1f   : > { %1186 = vmatmul.msk.bf16.vlgmr.msra.gmra.mxu0 %vm463_vm0, %v442_v4 }
  0x9c   : > { %v476_v6 = vpop.f32.mrf.mxu0 }
  0x9d   : > { %v477_v7 = vadd.f32 %v1332_v5, %v476_v6 }
  0x9f   : > { %482 = vst.msk [vmem:[#allocation2] sm:$0xff] %vm481_vm1, %v477_v7  ;;  %502 = vrot.lane.b32.xlu2 %v477_v7, %s1446_s27  ;;  %494 = vrot.lane.b32.xlu1 %v477_v7, %s1447_s17 }
  0xa0   : > { %486 = vrot.lane.b32.xlu0 %v477_v7, %s1448_s14 }
  0xa4   : > { %v478_v8 = vpop.f32.mrf.mxu0 }
  0xa5   : > { %v479_v9 = vadd.f32 %v1332_v5, %v478_v8 }
  0xa7   : > { %483 = vst.msk [vmem:[#allocation2 + $0x8] sm:$0xff] %vm481_vm1, %v479_v9  ;;  %520 = vrot.lane.b32.xlu2 %v477_v7, %s1449_s24  ;;  %529 = vrot.lane.b32.xlu1 %v477_v7, %s1450_s30 }
  0xa8   : > { %511 = vrot.lane.b32.xlu0 %v477_v7, %s1451_s15 }
  0xaf   : > { %547 = vrot.lane.b32.xlu2 %v477_v7, %s1452_s16  ;;  %556 = vrot.lane.b32.xlu1 %v477_v7, %s1453_s21 }
  0xb0   : > { %538 = vrot.lane.b32.xlu0 %v477_v7, %s1454_s22 }
  0xb7   : > { %504 = vrot.lane.b32.xlu2 %v479_v9, %s1446_s27  ;;  %496 = vrot.lane.b32.xlu1 %v479_v9, %s1447_s17 }
  0xb8   : > { %565 = vrot.lane.b32.xlu0 %v477_v7, %s1455_s20 }
  0xbf   : > { %531 = vrot.lane.b32.xlu2 %v479_v9, %s1450_s30  ;;  %513 = vrot.lane.b32.xlu1 %v479_v9, %s1451_s15 }
  0xc0   : > { %488 = vrot.lane.b32.xlu0 %v479_v9, %s1448_s14 }
  0xc7   : > { %558 = vrot.lane.b32.xlu2 %v479_v9, %s1453_s21  ;;  %540 = vrot.lane.b32.xlu1 %v479_v9, %s1454_s22 }
  0xc8   : > { %522 = vrot.lane.b32.xlu0 %v479_v9, %s1449_s24 }
  0xcf   : > { %574 = vrot.lane.b32.xlu2 %v477_v7, %s1456_s0  ;;  %567 = vrot.lane.b32.xlu1 %v479_v9, %s1455_s20  ;;  %s1647_s20 = smov 0  }
  0xd0   : > { %549 = vrot.lane.b32.xlu0 %v479_v9, %s1452_s16 }
  0xd8   : > { %576 = vrot.lane.b32.xlu0 %v479_v9, %s1456_s0  ;;  %s1641_s0 = scalar_lea.vmem [#allocation5], %s1586_s23 }
  0xf9   : > { %v503_v10 = vpop.permute.xlu2 %502 }
  0xfa   : > { %509 = vst.msk [vmem:[#allocation2 + $0x10] sm:$0xff] %vm481_vm1, %v503_v10 }
 0x101   : > { %v521_v11 = vpop.permute.xlu2 %520 }
 0x102   : > { %527 = vst.msk [vmem:[#allocation4 + $0x10] sm:$0xff] %vm481_vm1, %v521_v11 }
 0x109   : > { %v548_v12 = vpop.permute.xlu2 %547 }
 0x10a   : > { %554 = vst.msk [vmem:[#allocation4 + $0x20] sm:$0xff] %vm481_vm1, %v548_v12 }
 0x111   : > { %v505_v13 = vpop.permute.xlu2 %504  ;;  %v495_v14 = vpop.permute.xlu1 %494 }
 0x112   : > { %510 = vst.msk [vmem:[#allocation2 + $0x18] sm:$0xff] %vm481_vm1, %v505_v13  ;;  %v487_v15 = vpop.permute.xlu0 %486 }
 0x113   : > { %500 = vst.msk [vmem:[#allocation4] sm:$0xff] %vm481_vm1, %v495_v14 }
 0x114   : > { %492 = vst.msk [vmem:[#allocation3] sm:$0xff] %vm481_vm1, %v487_v15 }
 0x119   : > { %v532_v16 = vpop.permute.xlu2 %531  ;;  %v530_v17 = vpop.permute.xlu1 %529 }
 0x11a   : > { %537 = vst.msk [vmem:[#allocation2 + $0x28] sm:$0xff] %vm481_vm1, %v532_v16  ;;  %v512_v18 = vpop.permute.xlu0 %511 }
 0x11b   : > { %536 = vst.msk [vmem:[#allocation2 + $0x20] sm:$0xff] %vm481_vm1, %v530_v17 }
 0x11c   : > { %518 = vst.msk [vmem:[#allocation3 + $0x10] sm:$0xff] %vm481_vm1, %v512_v18 }
 0x121   : > { %v559_v19 = vpop.permute.xlu2 %558  ;;  %v557_v20 = vpop.permute.xlu1 %556 }
 0x122   : > { %564 = vst.msk [vmem:[#allocation2 + $0x38] sm:$0xff] %vm481_vm1, %v559_v19  ;;  %v539_v21 = vpop.permute.xlu0 %538 }
 0x123   : > { %563 = vst.msk [vmem:[#allocation2 + $0x30] sm:$0xff] %vm481_vm1, %v557_v20 }
 0x124   : > { %545 = vst.msk [vmem:[#allocation3 + $0x20] sm:$0xff] %vm481_vm1, %v539_v21 }
 0x129   : > { %v575_v24 = vpop.permute.xlu2 %574  ;;  %v497_v25 = vpop.permute.xlu1 %496 }
 0x12a   : > { %581 = vst.msk [vmem:[#allocation4 + $0x30] sm:$0xff] %vm481_vm1, %v575_v24  ;;  %v566_v26 = vpop.permute.xlu0 %565 }
 0x12b   : > { %501 = vst.msk [vmem:[#allocation4 + $0x8] sm:$0xff] %vm481_vm1, %v497_v25 }
 0x12c   : > { %572 = vst.msk [vmem:[#allocation3 + $0x30] sm:$0xff] %vm481_vm1, %v566_v26 }
 0x131   : > { %v514_v29 = vpop.permute.xlu1 %513 }
 0x132   : > { %519 = vst.msk [vmem:[#allocation3 + $0x18] sm:$0xff] %vm481_vm1, %v514_v29  ;;  %v489_v30 = vpop.permute.xlu0 %488 }
 0x133   : > { %493 = vst.msk [vmem:[#allocation3 + $0x8] sm:$0xff] %vm481_vm1, %v489_v30 }
 0x139   : > { %v541_v31 = vpop.permute.xlu1 %540 }
 0x13a   : > { %546 = vst.msk [vmem:[#allocation3 + $0x28] sm:$0xff] %vm481_vm1, %v541_v31  ;;  %v523_v32 = vpop.permute.xlu0 %522 }
 0x13b   : > { %528 = vst.msk [vmem:[#allocation4 + $0x18] sm:$0xff] %vm481_vm1, %v523_v32 }
 0x141   : > { %v568_v33 = vpop.permute.xlu1 %567 }
 0x142   : > { %573 = vst.msk [vmem:[#allocation3 + $0x38] sm:$0xff] %vm481_vm1, %v568_v33  ;;  %v550_v34 = vpop.permute.xlu0 %549 }
 0x143   : > { %555 = vst.msk [vmem:[#allocation4 + $0x28] sm:$0xff] %vm481_vm1, %v550_v34 }
 0x14a   : > { %v577_v35 = vpop.permute.xlu0 %576 }
 0x14b   : > { %582 = vst.msk [vmem:[#allocation4 + $0x38] sm:$0xff] %vm481_vm1, %v577_v35 }
 0x14c LB: >> { %s1659_s23 = sshll.u32 %s1444_s20, 4  ;;  %vm645_vm4 = vcmask 1043456   ;;  %vm665_vm5 = vcmask 130048   ;;  %s1192_s24 = sshll.u32 %s1444_s20, 2  ;;  %s1444_s20 = sphi %s1647_s20, %s595_s20   ;;  %v1440_v37 = vphi %v1645_v37, %v1832_v37   ;;  %v1436_v36 = vphi %v1643_v36, %v1831_v36  }
 0x14d   : >> { %s602_s27 = scalar_lea.vmem [#allocation3], %s1659_s23  ;;  %s599_s17 = scalar_lea.vmem [#allocation2], %s1659_s23 }
 0x14e   : >> { %v603_v38 = vld [vmem:[%s602_s27] sm:$0xff]  ;;  %v604_v39 = vld [vmem:[%s602_s27 + $0x8] sm:$0xff]  ;;  %s605_s14 = scalar_lea.vmem [#allocation4], %s1659_s23  ;;  %s796_s16 = scalar_lea.vmem %s1809_s3, %s1192_s24 }
 0x14f   : >> { %609 = vxpose.xlu0.b32.start [1/2] (short) (narrow) %v603_v38, 8  ;;  %v600_v41 = vld [vmem:[%s599_s17] sm:$0xff]  ;;  %v601_v42 = vld [vmem:[%s599_s17 + $0x8] sm:$0xff]  ;;  %s595_s20 = sadd.s32 1, %s1444_s20  }
 0x150   : >> { %v608_v45 = vpack.c.bf16 %v601_v42, %v600_v41  ;;  %v733_v46 = vand.u32 2147483647, %v600_v41  ;;  %v734_v54 = vand.u32 2147483647, %v601_v42  ;;  %v1457_v41 = vmov 0.0   ;;  %p592_p11 = scmp.ge.s32.totalorder %s595_s20, 4  }
 0x151   : > { %s1253_s22 = sshll.u32 (%p592_p11), %s1552_s29, 4  ;;  %s1087_s17 = sshll.u32 (%p592_p11), %s1641_s0, 4  ;;  %s1088_s17 = int_to_ptr.vmem [resolvable:$true] %s1087_s17 }
 0x152   : >> { %v735_v47 = vsel %vm481_vm1, %v733_v46, 0.0  ;;  %v738_v55 = vsel %vm481_vm1, %v734_v54, 0.0  ;;  %v606_v6 = vld [vmem:[%s605_s14] sm:$0xff]  ;;  %v607_v7 = vld [vmem:[%s605_s14 + $0x8] sm:$0xff]  ;;  %s1086_s27 = scalar_lea.hbm (%p592_p11), %s1819_s13, %s1253_s22  ;;  %s1833_s29 = sand.u32 (%p592_p11), 1, %s1424_s26  }
 0x153   : >> { %v715_v8 = vpack.c.bf16 %v607_v7, %v606_v6  ;;  %v797_v46 = vld [vmem:[%s796_s16] sm:$0xf]  ;;  %s1089_s14 = sshll.u32 (%p592_p11), %s1086_s27, 4  ;;  %s1075_s24 = scalar_lea.sflag (%p592_p11), [#allocation6], %s1833_s29  ;;  %s1090_s14 = int_to_ptr.hbm [resolvable:$true] %s1089_s14 }
 0x154   : > { %s1372_s30 = sshra.s32 (%p592_p11), %s1090_s14, 4  ;;  %s1378_s22 = scalar_lea.hbm (%p592_p11), %s1819_s13, 32  ;;  %s1373_s30 = int_to_ptr.hbm [resolvable:$true] %s1372_s30 }
 0x155   : >> { %726 = vmatpush.bf16.msra.mxu1 %v715_v8  ;;  %s1374_s15 = scalar_lea.hbm (%p592_p11), %s1373_s30, 16  ;;  %p1379_p1 = scmp.lt.s32.totalorder (%p592_p11), %s1373_s30, %s1819_s13 }
 0x156   : > { %p1375_p12 = scmp.ne.s32.totalorder (%p592_p11), %s1373_s30, %s1374_s15  ;;  %p1380_p2 = scmp.lt.s32.totalorder (%p592_p11), %s1378_s22, %s1374_s15 }
 0x157   : >> { %610 = vxpose.xlu0.b32.end [2/2] (short) (narrow) %v604_v39, 8 }
 0x158   : > { %p1376_p13 = pnand (%p592_p11), %p1375_p12, %p1569_p5  ;;  %p1381_p3 = por (%p592_p11), %p1380_p2, %p1379_p1 }
 0x15a   : > { %p1377_p0 = pneg (%p592_p11), %p1376_p13 }
 0x15c   : > { %p1382_p4 = pnand (%p592_p11), %p1381_p3, %p1377_p0 }
 0x1c8   : >> { %736 = vadd.xlane.f32.xlu0 %v735_v47  ;;  %v802_v47 = vsel %vm645_vm4, %v797_v46, 0 }
 0x1c9   : >> { %811 = vmatpush.bf16.msra.mxu2 %v802_v47 }
 0x1f3   : >> { %v625_v40 = vpop.trf.xlu0 }
 0x1f4   : >> { %v641_v43 = vpack.c.bf16 %v625_v40, %v625_v40 }
 0x1f6   : >> { %v647_v44 = vsel %vm645_vm4, %v641_v43, 0 }
 0x1f7   : >> { %656 = vmatpush.bf16.msra.mxu0 %v647_v44 }
 0x1fa   : >> { %1188 = vmatmul.msk.bf16.vlgmr.msra.gmra.mxu0 %vm481_vm1, %v608_v45 }
 0x23b   : >> { %v737_v4 = vpop.xlane.xlu0 %736 }
 0x277   : >> { %v658_v48 = vpop.f32.mrf.mxu0 }
 0x278   : >> { %v663_v49 = vsel %vm588_vm2, %v658_v48, -1e+30 }
 0x279   : >> { %v666_v50 = vsel %vm665_vm5, %v663_v49, -inf }
 0x27a   : >> { %667 = vmax.xlane.f32.xlu1 %v666_v50 }
 0x27f   : >> { %v660_v51 = vpop.f32.mrf.mxu0 }
 0x280   : >> { %v664_v52 = vsel %vm589_vm3, %v660_v51, -1e+30 }
 0x281   : >> { %v669_v53 = vsel %vm665_vm5, %v664_v52, -inf }
 0x282   : >> { %670 = vmax.xlane.f32.xlu1 %v669_v53 }
 0x28a   : >> { %739 = vadd.xlane.f32.xlu1 %v738_v55 }
 0x2ed   : >> { %v668_v56 = vpop.xlane.xlu1 %667 }
 0x2ee   : >> { %v672_v57 = vsub.f32 %v663_v49, %v668_v56 }
 0x2f0   : >> { %v674_v58 = vmul.f32 1.442695, %v672_v57 }
 0x2f2   : >> { %1333 = vpow2.f32 %v674_v58 }
 0x2f5   : >> { %v671_v59 = vpop.xlane.xlu1 %670 }
 0x2f6   : >> { %v673_v60 = vsub.f32 %v664_v52, %v671_v59  ;;  %v1341_v59 = vld [vmem:[%s1810_s4] ss:$0 sm:$0xff] (%p592_p11) }
 0x2f8   : >> { %v1334_v61 = vpop.eup %1333  ;;  %v676_v62 = vmul.f32 1.442695, %v673_v60 }
 0x2f9   : >> { %v678_v63 = vsel %vm665_vm5, %v1334_v61, 0.0 }
 0x2fa   : >> { %1335 = vpow2.f32 %v676_v62  ;;  %679 = vadd.xlane.f32.xlu2 %v678_v63 }
 0x2fd   : >> { %v740_v5 = vpop.xlane.xlu1 %739 }
 0x300   : >> { %v1336_v0 = vpop.eup %1335 }
 0x301   : >> { %v681_v1 = vsel %vm665_vm5, %v1336_v0, 0.0 }
 0x302   : >> { %682 = vadd.xlane.f32.xlu2 %v681_v1  ;;  %v1458_v1 = vmov (%p592_p11), 32.0  }
 0x32b   : >> { %741 = vxpose.xlu2.b32.start [1/2] (short) (narrow) %v737_v4, 8 }
 0x333   : >> { %742 = vxpose.xlu2.b32.end [2/2] (short) (narrow) %v740_v5, 8 }
 0x36d   : >> { %v680_v9 = vpop.xlane.xlu2 %679 }
 0x36e   : >> { %1337 = vrcp.f32 %v680_v9  ;;  %v695_v18 = vand.u32 2147483648, %v680_v9  ;;  %vm689_vm7 = vweird.f32 %v680_v9  ;;  %v693_v19 = vand.u32 2147483647, %v680_v9 }
 0x370   : >> { %v696_v26 = vor.u32 1.1754944e-38, %v695_v18  ;;  %vm694_vm10 = vcmp.eq.f32.partialorder %v693_v19, 8.507059e+37  ;;  %v1252_v19 = vld [vmem:[%s1815_s9 + $0x38] sm:$0xff] (%p592_p11) }
 0x374   : >> { %v1338_v10 = vpop.eup %1337 }
 0x375   : >> { %v685_v11 = vmul.f32 %v1338_v10, %v680_v9  ;;  %v683_v12 = vpop.xlane.xlu2 %682  ;;  %vm690_vm6 = vweird.f32 %v1338_v10 }
 0x376   : >> { %1339 = vrcp.f32 %v683_v12  ;;  %vm691_vm8 = vmor %vm689_vm7, %vm690_vm6  ;;  %v710_v21 = vand.u32 2147483648, %v683_v12  ;;  %v708_v24 = vand.u32 2147483647, %v683_v12  ;;  %vm704_vm11 = vweird.f32 %v683_v12 }
 0x377   : >> { %v686_v13 = vsub.f32 1.0, %v685_v11  ;;  %1348 = vrcp.f32 (%p592_p11), %v1458_v1  ;;  %v1345_v1 = vld [vmem:[%s1816_s10] ss:$0 sm:$0xff] (%p592_p11) }
 0x378   : >> { %v711_v30 = vor.u32 1.1754944e-38, %v710_v21  ;;  %vm709_vm13 = vcmp.eq.f32.partialorder %v708_v24, 8.507059e+37 }
 0x379   : >> { %v687_v14 = vmul.f32 %v1338_v10, %v686_v13 }
 0x37b   : >> { %v688_v16 = vadd.f32 %v1338_v10, %v687_v14  ;;  %v1244_v14 = vld [vmem:[%s1813_s7 + $0x8] sm:$0xff] (%p592_p11) }
 0x37c   : >> { %v1340_v15 = vpop.eup %1339  ;;  %921 = vmatpush.bf16.msra.mxu0 (%p592_p11), %v1244_v14 }
 0x37d   : >> { %v700_v17 = vmul.f32 %v1340_v15, %v683_v12  ;;  %vm705_vm9 = vweird.f32 %v1340_v15  ;;  %v692_v25 = vsel %vm691_vm8, %v1338_v10, %v688_v16 }
 0x37e   : >> { %vm706_vm12 = vmor %vm704_vm11, %vm705_vm9  ;;  %v697_v31 = vsel %vm694_vm10, %v696_v26, %v692_v25 }
 0x37f   : >> { %v701_v20 = vsub.f32 1.0, %v700_v17  ;;  %v698_v34 = vmul.f32 %v1334_v61, %v697_v31 }
 0x381   : >> { %v702_v22 = vmul.f32 %v1340_v15, %v701_v20 }
 0x383   : >> { %v703_v29 = vadd.f32 %v1340_v15, %v702_v22  ;;  %v1251_v22 = vld [vmem:[%s1815_s9 + $0x30] sm:$0xff] (%p592_p11) }
 0x385   : >> { %v707_v32 = vsel %vm706_vm12, %v1340_v15, %v703_v29  ;;  %v1243_v15 = vld [vmem:[%s1813_s7] sm:$0xff] (%p592_p11)  ;;  %v1250_v29 = vld [vmem:[%s1815_s9 + $0x28] sm:$0xff] (%p592_p11) }
 0x386   : >> { %v712_v33 = vsel %vm709_vm13, %v711_v30, %v707_v32  ;;  %922 = vmatpush.bf16.msra.mxu0 (%p592_p11), %v1243_v15  ;;  %v1249_v32 = vld [vmem:[%s1815_s9 + $0x20] sm:$0xff] (%p592_p11) }
 0x387   : >> { %v713_v35 = vmul.f32 %v1336_v0, %v712_v33 }
 0x389   : >> { %v714_v38 = vpack.c.bf16 %v713_v35, %v698_v34 }
 0x38b   : >> { %1189 = vmatmul.msk.bf16.vlgmr.msra.gmra.mxu1 %vm665_vm5, %v714_v38 }
 0x38c   : > { %1000 = vmatpush.bf16.msra.mxu1 (%p592_p11), %v1252_v19 }
 0x390   : > { %1001 = vmatpush.bf16.msra.mxu1 (%p592_p11), %v1251_v22 }
 0x394   : > { %1002 = vmatpush.bf16.msra.mxu1 (%p592_p11), %v1250_v29 }
 0x398   : > { %1003 = vmatpush.bf16.msra.mxu1 (%p592_p11), %v1249_v32 }
 0x3c4   : >> { %v757_v39 = vpop.trf.xlu2 }
 0x3c5   : >> { %v773_v40 = vperm.slane %v757_v39, 0 }
 0x3c7   : >> { %vm774_vm14 = vcmp.gt.f32.partialorder %v773_v40, %v737_v4  ;;  %vm775_vm15 = vcmp.gt.f32.partialorder %v773_v40, %v740_v5  ;;  %v1349_v4 = vpop.eup (%p592_p11), %1348 }
 0x3c8   : >> { %v1190_v42 = vsel %vm774_vm14, 1.0, %v1457_v41  ;;  %v1191_v44 = vsel %vm775_vm15, 1.0, %v1457_v41  ;;  %v835_v5 = vmul.f32 (%p592_p11), 32.0, %v1349_v4 }
 0x3c9   : >> { %v780_v43 = vsel %vm665_vm5, %v1190_v42, 0.0  ;;  %v783_v45 = vsel %vm665_vm5, %v1191_v44, 0.0  ;;  %v1342_v44 = vld [vmem:[%s1811_s5] ss:$0 sm:$0xff] (%p592_p11) }
 0x3ca   : >> { %781 = vadd.xlane.f32.xlu1 %v780_v43  ;;  %v836_v23 = vsub.f32 (%p592_p11), 1.0, %v835_v5 }
 0x3cc   : > { %v837_v27 = vmul.f32 (%p592_p11), %v1349_v4, %v836_v23 }
 0x3ce   : > { %v838_v28 = vadd.f32 (%p592_p11), %v1349_v4, %v837_v27 }
 0x3d2   : >> { %784 = vadd.xlane.f32.xlu1 %v783_v45 }
 0x408   : >> { %v728_v48 = vpop.f32.mrf.mxu1 }
 0x410   : >> { %v730_v51 = vpop.f32.mrf.mxu1 }
 0x43d   : >> { %v782_v49 = vpop.xlane.xlu1 %781 }
 0x43e   : >> { %vm786_vm6 = vcmp.lt.f32.partialorder %v782_v49, 13.0  ;;  %v1343_v49 = vld [vmem:[%s1812_s6] ss:$0 sm:$0xff] (%p592_p11) }
 0x43f   : >> { %v792_v52 = vsel %vm786_vm6, %v728_v48, 0.0 }
 0x445   : >> { %v785_v50 = vpop.xlane.xlu1 %784 }
 0x446   : >> { %vm787_vm7 = vcmp.lt.f32.partialorder %v785_v50, 13.0 }
 0x447   : >> { %v793_v53 = vsel %vm787_vm7, %v730_v51, 0.0 }
 0x448   : >> { %v794_v54 = vpack.c.bf16 %v793_v53, %v792_v52 }
 0x44a   : >> { %1193 = vmatmul.msk.bf16.vlgmr.msra.gmra.mxu2 %vm481_vm1, %v794_v54  ;;  %vm839_vm1 = vweird.f32 (%p592_p11), %v1349_v4  ;;  %v1248_v54 = vld [vmem:[%s1815_s9 + $0x18] sm:$0xff] (%p592_p11) }
 0x44b   : > { %1004 = vmatpush.bf16.msra.mxu1 (%p592_p11), %v1248_v54 }
 0x4cd   : >> { %v813_v55 = vpop.f32.mrf.mxu2 }
 0x4ce   : >> { %v818_v56 = vadd.f32 %v1440_v37, %v813_v55   ;;  %v1247_v55 = vld [vmem:[%s1815_s9 + $0x10] sm:$0xff] (%p592_p11) }
 0x4cf   : > { %1005 = vmatpush.bf16.msra.mxu1 (%p592_p11), %v1247_v55 }
 0x4d0   : >> { %v1832_v37 = vmov %v818_v56  ;;  %v824_v60 = vadd.f32 (%p592_p11), %v1341_v59, %v818_v56  ;;  %v1246_v56 = vld [vmem:[%s1815_s9 + $0x8] sm:$0xff] (%p592_p11) }
 0x4d2   : > { %v826_v37 = vadd.f32 (%p592_p11), %v824_v60, %v1595_v2 }
 0x4d3   : > { %1006 = vmatpush.bf16.msra.mxu1 (%p592_p11), %v1246_v56 }
 0x4d4   : > { %594 = sbr.rel (!%p592_p11) target bundleno = 332 (0x14c), region = 127  ;;  %v828_v62 = vsel (%p592_p11), %vm463_vm0, %v826_v37, 0.0 }
 0x4d5   : >> { %v815_v57 = vpop.f32.mrf.mxu2  ;;  %829 = vadd.xlane.f32.xlu0 (%p592_p11), %v828_v62 }
 0x4d6   : >> { %v819_v58 = vadd.f32 %v1436_v36, %v815_v57   ;;  %v1245_v57 = vld [vmem:[%s1815_s9] sm:$0xff] (%p592_p11) }
 0x4d7   : > { %1007 = vmatpush.bf16.msra.mxu1 (%p592_p11), %v1245_v57 }
 0x4d8   : >> { %v1831_v36 = vmov %v819_v58  ;;  %v825_v61 = vadd.f32 (%p592_p11), %v1341_v59, %v819_v58  ;;  %v1344_v59 = vld [vmem:[%s1814_s8] ss:$0 sm:$0xff] (%p592_p11) }
 0x4d9   : > { %v1703_v36 = vsel %vm839_vm1, %v1349_v4, %v838_v28 }
 0x4da   : > { %v827_v63 = vadd.f32 %v825_v61, %v1597_v3 }
 0x4dc   : > { %v831_v0 = vsel %vm463_vm0, %v827_v63, 0.0 }
 0x4dd   : > { %832 = vadd.xlane.f32.xlu0 %v831_v0 }
 0x548   : > { %v830_v2 = vpop.xlane.xlu0 %829 }
 0x549   : > { %v841_v6 = vmul.f32 %v1703_v36, %v830_v2 }
 0x54b   : > { %v843_v7 = vsub.f32 %v826_v37, %v841_v6 }
 0x54d   : > { %v845_v8 = vmul.f32 %v843_v7, %v843_v7 }
 0x54f   : > { %v847_v3 = vsel %vm463_vm0, %v845_v8, 0.0 }
 0x550   : > { %848 = vadd.xlane.f32.xlu1 %v847_v3  ;;  %v833_v9 = vpop.xlane.xlu0 %832 }
 0x551   : > { %v842_v10 = vmul.f32 %v1703_v36, %v833_v9 }
 0x553   : > { %v844_v11 = vsub.f32 %v827_v63, %v842_v10 }
 0x555   : > { %v846_v12 = vmul.f32 %v844_v11, %v844_v11 }
 0x557   : > { %v850_v13 = vsel %vm463_vm0, %v846_v12, 0.0 }
 0x558   : > { %851 = vadd.xlane.f32.xlu1 %v850_v13 }
 0x5c3   : > { %v849_v16 = vpop.xlane.xlu1 %848 }
 0x5c4   : > { %v853_v17 = vmul.f32 %v849_v16, %v1703_v36 }
 0x5c6   : > { %v855_v18 = vadd.f32 1e-05, %v853_v17 }
 0x5c8   : > { %1350 = vrsqrt.f32 %v855_v18  ;;  %vm863_vm3 = vweird.f32 %v855_v18 }
 0x5cb   : > { %v852_v20 = vpop.xlane.xlu1 %851 }
 0x5cc   : > { %v854_v21 = vmul.f32 %v852_v20, %v1703_v36 }
 0x5ce   : > { %v1351_v24 = vpop.eup %1350  ;;  %v856_v25 = vadd.f32 1e-05, %v854_v21 }
 0x5cf   : > { %v858_v26 = vmul.f32 %v1351_v24, %v855_v18  ;;  %vm864_vm2 = vweird.f32 %v1351_v24 }
 0x5d0   : > { %1352 = vrsqrt.f32 %v856_v25  ;;  %vm865_vm4 = vmor %vm863_vm3, %vm864_vm2  ;;  %vm873_vm8 = vweird.f32 %v856_v25 }
 0x5d1   : > { %v859_v30 = vmul.f32 %v1351_v24, %v858_v26 }
 0x5d3   : > { %v860_v31 = vmul.f32 0.5, %v859_v30 }
 0x5d5   : > { %v861_v33 = vsub.f32 1.5, %v860_v31 }
 0x5d6   : > { %v1353_v34 = vpop.eup %1352 }
 0x5d7   : > { %v862_v35 = vmul.f32 %v1351_v24, %v861_v33  ;;  %v868_v38 = vmul.f32 %v1353_v34, %v856_v25  ;;  %vm874_vm5 = vweird.f32 %v1353_v34 }
 0x5d8   : > { %vm875_vm9 = vmor %vm873_vm8, %vm874_vm5 }
 0x5d9   : > { %v869_v39 = vmul.f32 %v1353_v34, %v868_v38  ;;  %v866_v41 = vsel %vm865_vm4, %v1351_v24, %v862_v35 }
 0x5da   : > { %v877_v43 = vmul.f32 %v866_v41, %v843_v7 }
 0x5db   : > { %v870_v40 = vmul.f32 0.5, %v869_v39  ;;  %v1347_v39 = vld [vmem:[%s1818_s12] ss:$0 sm:$0xff] }
 0x5dc   : > { %v883_v48 = vmul.f32 %v1342_v44, %v877_v43 }
 0x5dd   : > { %v871_v42 = vsub.f32 1.5, %v870_v40 }
 0x5de   : > { %v889_v51 = vadd.f32 %v1343_v49, %v883_v48 }
 0x5df   : > { %v872_v45 = vmul.f32 %v1353_v34, %v871_v42 }
 0x5e1   : > { %v876_v46 = vsel %vm875_vm9, %v1353_v34, %v872_v45  ;;  %v1346_v34 = vld [vmem:[%s1817_s11] ss:$0 sm:$0xff] }
 0x5e2   : > { %v878_v47 = vmul.f32 %v876_v46, %v844_v11 }
 0x5e4   : > { %v884_v50 = vmul.f32 %v1342_v44, %v878_v47 }
 0x5e6   : > { %v890_v52 = vadd.f32 %v1343_v49, %v884_v50 }
 0x5e8   : > { %v891_v53 = vpack.c.bf16 %v890_v52, %v889_v51 }
 0x5ea   : > { %1202 = vmatmul.msk.bf16.vlgmr.msra.gmra.mxu0 %vm463_vm0, %v891_v53 }
 0x667   : > { %v924_v58 = vpop.f32.mrf.mxu0 }
 0x668   : > { %v925_v60 = vadd.f32 %v1344_v59, %v924_v58 }
 0x66a   : > { %v929_v62 = vmax.f32 %v925_v60, 0.0 }
 0x66f   : > { %v926_v37 = vpop.f32.mrf.mxu0 }
 0x670   : > { %v927_v61 = vadd.f32 %v1344_v59, %v926_v37 }
 0x672   : > { %v930_v63 = vmax.f32 %v927_v61, 0.0 }
 0x674   : > { %v931_v0 = vpack.c.bf16 %v930_v63, %v929_v62 }
 0x676   : > { %1008 = vmatmul.bf16.vlgmr.msra.gmra.mxu1 %v931_v0 }
 0x6f3   : > { %v1009_v4 = vpop.f32.mrf.mxu1 }
 0x6f4   : > { %v1010_v5 = vadd.f32 %v1345_v1, %v1009_v4 }
 0x6f6   : > { %v1014_v23 = vadd.f32 %v1010_v5, %v889_v51 }
 0x6f8   : > { %v1016_v27 = vsel %vm463_vm0, %v1014_v23, 0.0 }
 0x6f9   : > { %1017 = vadd.xlane.f32.xlu2 %v1016_v27 }
 0x6fb   : > { %v1011_v28 = vpop.f32.mrf.mxu1 }
 0x6fc   : > { %v1012_v2 = vadd.f32 %v1345_v1, %v1011_v28 }
 0x6fe   : > { %v1015_v6 = vadd.f32 %v1012_v2, %v890_v52 }
 0x700   : > { %v1019_v7 = vsel %vm463_vm0, %v1015_v6, 0.0 }
 0x701   : > { %1020 = vadd.xlane.f32.xlu2 %v1019_v7 }
 0x76c   : > { %v1018_v8 = vpop.xlane.xlu2 %1017 }
 0x76d   : > { %v1022_v3 = vmul.f32 %v1018_v8, %v1703_v36 }
 0x76f   : > { %v1024_v9 = vsub.f32 %v1014_v23, %v1022_v3 }
 0x771   : > { %v1026_v10 = vmul.f32 %v1024_v9, %v1024_v9 }
 0x773   : > { %v1028_v11 = vsel %vm463_vm0, %v1026_v10, 0.0 }
 0x774   : > { %1029 = vadd.xlane.f32.xlu0 %v1028_v11  ;;  %v1021_v12 = vpop.xlane.xlu2 %1020 }
 0x775   : > { %v1023_v13 = vmul.f32 %v1021_v12, %v1703_v36 }
 0x777   : > { %v1025_v14 = vsub.f32 %v1015_v6, %v1023_v13 }
 0x779   : > { %v1027_v15 = vmul.f32 %v1025_v14, %v1025_v14 }
 0x77b   : > { %v1031_v16 = vsel %vm463_vm0, %v1027_v15, 0.0 }
 0x77c   : > { %1032 = vadd.xlane.f32.xlu1 %v1031_v16 }
 0x7e7   : > { %v1030_v17 = vpop.xlane.xlu0 %1029 }
 0x7e8   : > { %v1034_v18 = vmul.f32 %v1030_v17, %v1703_v36 }
 0x7ea   : > { %v1036_v19 = vadd.f32 1e-05, %v1034_v18 }
 0x7ec   : > { %1354 = vrsqrt.f32 %v1036_v19  ;;  %vm1044_vm11 = vweird.f32 %v1036_v19 }
 0x7ef   : > { %v1033_v20 = vpop.xlane.xlu1 %1032 }
 0x7f0   : > { %v1035_v21 = vmul.f32 %v1033_v20, %v1703_v36 }
 0x7f2   : > { %v1355_v22 = vpop.eup %1354  ;;  %v1037_v24 = vadd.f32 1e-05, %v1035_v21 }
 0x7f3   : > { %v1039_v25 = vmul.f32 %v1355_v22, %v1036_v19  ;;  %vm1045_vm10 = vweird.f32 %v1355_v22 }
 0x7f4   : > { %1356 = vrsqrt.f32 %v1037_v24  ;;  %vm1046_vm12 = vmor %vm1044_vm11, %vm1045_vm10  ;;  %vm1054_vm14 = vweird.f32 %v1037_v24 }
 0x7f5   : > { %v1040_v26 = vmul.f32 %v1355_v22, %v1039_v25 }
 0x7f7   : > { %v1041_v29 = vmul.f32 0.5, %v1040_v26 }
 0x7f9   : > { %v1042_v30 = vsub.f32 1.5, %v1041_v29 }
 0x7fa   : > { %v1357_v31 = vpop.eup %1356 }
 0x7fb   : > { %v1043_v32 = vmul.f32 %v1355_v22, %v1042_v30  ;;  %v1049_v33 = vmul.f32 %v1357_v31, %v1037_v24  ;;  %vm1055_vm13 = vweird.f32 %v1357_v31 }
 0x7fc   : > { %vm1056_vm15 = vmor %vm1054_vm14, %vm1055_vm13 }
 0x7fd   : > { %v1047_v36 = vsel %vm1046_vm12, %v1355_v22, %v1043_v32  ;;  %v1050_v35 = vmul.f32 %v1357_v31, %v1049_v33 }
 0x7fe   : > { %v1058_v38 = vmul.f32 %v1047_v36, %v1024_v9 }
 0x7ff   : > { %v1051_v40 = vmul.f32 0.5, %v1050_v35 }
 0x800   : > { %v1064_v41 = vmul.f32 %v1346_v34, %v1058_v38 }
 0x801   : > { %v1052_v42 = vsub.f32 1.5, %v1051_v40 }
 0x802   : > { %v1070_v43 = vadd.f32 %v1347_v39, %v1064_v41 }
 0x803   : > { %v1053_v44 = vmul.f32 %v1357_v31, %v1052_v42 }
 0x804   : > { %1072 = vst.msk [vmem:[%s1641_s0] sm:$0xff] %vm463_vm0, %v1070_v43 }
 0x805   : > { %v1057_v45 = vsel %vm1056_vm15, %v1357_v31, %v1053_v44 }
 0x806   : > { %v1059_v46 = vmul.f32 %v1057_v45, %v1025_v14 }
 0x808   : > { %v1065_v47 = vmul.f32 %v1346_v34, %v1059_v46 }
 0x80a   : > { %v1071_v48 = vadd.f32 %v1347_v39, %v1065_v47 }
 0x80c   : > { %1073 = vst.msk [vmem:[%s1641_s0 + $0x8] sm:$0xff] %vm463_vm0, %v1071_v48 }
 0x80d   : > { %1385 = shalt.err (!%p1382_p4)
}
 0x80e   : > { %s1459_s0 = smov 128   ;;  %s1460_s27 = smov 8  }
 0x80f   : > { %1254 = dma.vmem_to_hbm [thread:$0]  (%p1569_p5), %s1088_s17, 256, %s1090_s14, %s1075_s24, %s1459_s0, %s1459_s0, %s1460_s27  }
 0x810 PF: > { %p1260_p7 = scmp.ge.s32.totalorder %s1432_s28, 2  ;;  %s1104_s29 = sand.u32 1, %s1420_s25  }
 0x811   : > { %s1105_s16 = scalar_lea.sflag [#allocation6], %s1104_s29 }
 0x812   : > { %p1257_p8 = pnand %p1260_p7, %p1573_p6 }
 0x814   : > { %p1258_p9 = pneg %p1257_p8 }
 0x816   : > { %1415 = dma.done.wait (%p1258_p9), %s1105_s16, 256  }
 0x817   : > { %1417 = vsyncadd (%p1258_p9), %s1105_s16, 4294967040  ;;  %s1834_s28 = sld [smem:[#allocation9_spill]]  ;;  %s1837_s25 = smov %s1424_s26 }
 0x818   : > { %s1835_s30 = sld [smem:[#allocation8_spill]] }
 0x819   : > { %s1836_s27 = sld [smem:[#allocation10_spill]] }
 0x81d   : > { %p23_p10 = scmp.ge.s32.totalorder %s1834_s28, 4  }
 0x81e   : > { %s1838_s26 = smov %s1835_s30 }
 0x81f   :  { %25 = sbr.rel (!%p23_p10) target bundleno = 5 (0x5), region = 138 }
 0x824   :  { %1111 = vsyncpa [#allocation6], 1 }
 0x825   :  { %1113 = vsyncpa [#allocation6 + $0x1], 1 }

</bundles_post_ra>
